<compile_context>
chip_gen: v7x
topology: tpu7x:2x2x1
jax: 0.10.0
libtpu: 0.0.40
codegen_flags: <defaults>
</compile_context>

<pallas_src>
import functools

import jax
import jax.numpy as jnp
from jax import lax
from jax.experimental import pallas as pl
from jax.experimental.pallas import tpu as pltpu

IN_F, HID_F, OUT_F = 5, 10, 1
PCOLS = IN_F + 3          # packed params: [w1 (5 cols) | b1 | w2 | b2] -> (10, 8)
CHUNK = 256               # in-kernel lane chunk (bounds vreg pressure)
TB_MULT = 2 * CHUNK       # tile is a multiple of this -> even chunk count
TB_MAX = 32768            # max lanes per grid step (amortizes step overhead)


def _round_up(a, b):
    return ((a + b - 1) // b) * b


def mlp_kernel(p_ref, x_ref, o_ref, *, n_chunks, chunk):
    # p_ref: (10, 8) packed params (resident across the grid)
    # x_ref: (5,  TB) batch on lanes
    # o_ref: (1,  TB) lane-dense output
    p = p_ref[...]
    w1 = p[:, 0:IN_F]                        # (10, 5)  fc1.weight
    b1 = p[:, IN_F:IN_F + 1]                 # (10, 1)  fc1.bias
    w2 = p[:, IN_F + 1:IN_F + 2]             # (10, 1)  fc2.weight (as column)
    b2 = p[0:1, IN_F + 2:IN_F + 3]           # (1, 1)   fc2.bias

    # Hoist broadcasts that every chunk reuses (JAX doesn't CSE them).
    b1b = jnp.broadcast_to(b1, (HID_F, chunk))   # (10, chunk)
    w2b = jnp.broadcast_to(w2, (HID_F, chunk))   # (10, chunk)
    b2b = jnp.broadcast_to(b2, (OUT_F, chunk))   # (1,  chunk)

    def body(c, carry):
        off = pl.multiple_of(c * chunk, chunk)
        xc = x_ref[:, pl.ds(off, chunk)]         # (5, chunk)

        # fc1 on the VPU: 5 broadcast FMAs -> (10, chunk)
        h = b1b
        for k in range(IN_F):                    # static 5-iteration loop
            h = h + w1[:, k:k + 1] * xc[k:k + 1, :]

        # sigmoid via tanh: single EUP op + one FMA (full f32 accuracy)
        h = 0.5 + 0.5 * jnp.tanh(0.5 * h)

        # fc2: elementwise multiply + sublane (XLU) reduce -> (1, chunk)
        y = jnp.sum(h * w2b, axis=0, keepdims=True) + b2b
        y = 0.5 + 0.5 * jnp.tanh(0.5 * y)

        o_ref[:, pl.ds(off, chunk)] = y.astype(o_ref.dtype)
        return carry

    lax.fori_loop(0, n_chunks, body, 0, unroll=2)   # n_chunks is always even


def pack_params(w1, b1, w2, b2):
    """Pack PyTorch-layout params into one (10, 8) f32 operand.

    w1: (10, 5) fc1.weight   b1: (10,) fc1.bias
    w2: (1, 10) fc2.weight   b2: (1,)  fc2.bias
    """
    p = jnp.zeros((HID_F, PCOLS), jnp.float32)
    p = p.at[:, :IN_F].set(w1.astype(jnp.float32))
    p = p.at[:, IN_F].set(b1.astype(jnp.float32))
    p = p.at[:, IN_F + 1].set(w2[0].astype(jnp.float32))
    p = p.at[:, IN_F + 2].set(jnp.broadcast_to(b2.astype(jnp.float32), (HID_F,)))
    return p


def net_forward(x, params):
    """x: (B, 5) (PyTorch row-major convention); params: (10, 8) packed.

    Returns (B, 1) f32, matching Net.forward.
    """
    B = x.shape[0]

    # Lane tile: multiple of 2*CHUNK, as large as TB_MAX, but aim for >= 2
    # grid blocks for big batches so v7x's two TensorCores both get work.
    half = _round_up(pl.cdiv(B, 2), TB_MULT)
    tb = max(TB_MULT, min(TB_MAX, half))
    n_blocks = pl.cdiv(B, tb)
    Bp = n_blocks * tb
    n_chunks = tb // CHUNK          # even by construction

    # Single fused re-layout: (B, 5) -> (5, B) -> lane-pad to Bp.
    xt = jnp.pad(x.T.astype(jnp.float32), ((0, 0), (0, Bp - B)))

    kernel = functools.partial(mlp_kernel, n_chunks=n_chunks, chunk=CHUNK)

    yt = pl.pallas_call(
        kernel,
        out_shape=jax.ShapeDtypeStruct((OUT_F, Bp), jnp.float32),
        grid_spec=pltpu.PrefetchScalarGridSpec(
            num_scalar_prefetch=0,
            grid=(n_blocks,),
            in_specs=[
                pl.BlockSpec((HID_F, PCOLS), lambda i: (0, 0)),  # params resident
                pl.BlockSpec((IN_F, tb), lambda i: (0, i)),      # x tile streams
            ],
            out_specs=pl.BlockSpec((OUT_F, tb), lambda i: (0, i)),
        ),
        compiler_params=pltpu.CompilerParams(
            dimension_semantics=("parallel",),   # shard batch across TCs (v7x)
        ),
    )(params, xt)

    # Back to PyTorch's (B, 1) convention; padded lanes are dropped here.
    return yt[0, :B][:, None]


def init_params(key):
    """Deterministic init mirroring nn.Linear bounds, in PyTorch layout."""
    k1, k2, k3, k4 = jax.random.split(key, 4)
    bound1 = 1.0 / jnp.sqrt(IN_F)
    bound2 = 1.0 / jnp.sqrt(HID_F)
    w1 = jax.random.uniform(k1, (HID_F, IN_F), jnp.float32, -bound1, bound1)
    b1 = jax.random.uniform(k2, (HID_F,), jnp.float32, -bound1, bound1)
    w2 = jax.random.uniform(k3, (OUT_F, HID_F), jnp.float32, -bound2, bound2)
    b2 = jax.random.uniform(k4, (OUT_F,), jnp.float32, -bound2, bound2)
    return w1, b1, w2, b2


def reference_forward(x, w1, b1, w2, b2):
    hp = jax.lax.Precision.HIGHEST
    h = jax.nn.sigmoid(jnp.matmul(x, w1.T, precision=hp) + b1)
    y = jax.nn.sigmoid(jnp.matmul(h, w2.T, precision=hp) + b2)
    return y


if __name__ == "__main__":
    key = jax.random.PRNGKey(0)
    kx, kx2, kp = jax.random.split(key, 3)
    w1, b1, w2, b2 = init_params(kp)
    params = pack_params(w1, b1, w2, b2)

    # Small batch (matches the module's tiny MLP): single grid block.
    B = 8
    x = jax.random.normal(kx, (B, IN_F), jnp.float32)
    out = jax.block_until_ready(net_forward(x, params))
    ref = reference_forward(x, w1, b1, w2, b2)
    assert out.shape == (B, OUT_F)
    assert jnp.allclose(out, ref, atol=1e-5, rtol=1e-5), float(jnp.max(jnp.abs(out - ref)))

    # Larger, non-tile-aligned batch: exercises the 2-block grid (v7x's two
    # TCs), the in-kernel chunk loop, and the lane-padding path.
    B2 = 2500
    x2 = jax.random.normal(kx2, (B2, IN_F), jnp.float32)
    out2 = jax.block_until_ready(net_forward(x2, params))
    ref2 = reference_forward(x2, w1, b1, w2, b2)
    assert out2.shape == (B2, OUT_F)
    assert jnp.allclose(out2, ref2, atol=1e-5, rtol=1e-5), float(jnp.max(jnp.abs(out2 - ref2)))

    print("KERNEL_OK")
</pallas_src>

<mosaic_0001>
module attributes {stable_mosaic.version = 11 : i64} {
  func.func @mlp_kernel(%arg0: i32, %arg1: memref<10x8xf32, #tpu.memory_space<vmem>>, %arg2: memref<5x512xf32, #tpu.memory_space<vmem>>, %arg3: memref<1x512xf32, #tpu.memory_space<vmem>>) attributes {dimension_semantics = [#tpu.dimension_semantics<parallel>], iteration_bounds = array<i64: 1>, scalar_prefetch = 0 : i64, scratch_operands = 0 : i64, tpu.core_type = #tpu.core_type<tc>, window_params = [{pipeline_mode = #tpu.pipeline_mode<synchronous>, transform_indices = @transform_0, window_bounds = array<i64: 10, 8>}, {transform_indices = @transform_1, window_bounds = array<i64: 5, 512>}, {transform_indices = @transform_2, window_bounds = array<i64: 1, 512>}]} {
    %c0 = arith.constant 0 : index
    %c0_0 = arith.constant 0 : index
    %0 = vector.load %arg1[%c0, %c0_0] : memref<10x8xf32, #tpu.memory_space<vmem>>, vector<10x8xf32>
    %1 = vector.extract_strided_slice %0 {offsets = [0, 0], sizes = [10, 5], strides = [1, 1]} : vector<10x8xf32> to vector<10x5xf32>
    %2 = vector.extract_strided_slice %0 {offsets = [0, 5], sizes = [10, 1], strides = [1, 1]} : vector<10x8xf32> to vector<10x1xf32>
    %3 = vector.extract_strided_slice %0 {offsets = [0, 6], sizes = [10, 1], strides = [1, 1]} : vector<10x8xf32> to vector<10x1xf32>
    %4 = vector.extract_strided_slice %0 {offsets = [0, 7], sizes = [1, 1], strides = [1, 1]} : vector<10x8xf32> to vector<1x1xf32>
    %5 = vector.shape_cast %2 : vector<10x1xf32> to vector<10x1xf32>
    %6 = vector.broadcast %5 : vector<10x1xf32> to vector<10x256xf32>
    %7 = vector.shape_cast %3 : vector<10x1xf32> to vector<10x1xf32>
    %8 = vector.broadcast %7 : vector<10x1xf32> to vector<10x256xf32>
    %9 = vector.shape_cast %4 : vector<1x1xf32> to vector<1x1xf32>
    %10 = vector.broadcast %9 : vector<1x1xf32> to vector<1x256xf32>
    %c0_i32 = arith.constant 0 : i32
    %c256_i32 = arith.constant 256 : i32
    %11 = arith.muli %c0_i32, %c256_i32 : i32
    %12 = tpu.assume_multiple %11, 256 : i32
    %c0_1 = arith.constant 0 : index
    %13 = arith.index_cast %12 : i32 to index
    %14 = vector.load %arg2[%c0_1, %13] : memref<5x512xf32, #tpu.memory_space<vmem>>, vector<5x256xf32>
    %15 = vector.extract_strided_slice %1 {offsets = [0, 0], sizes = [10, 1], strides = [1, 1]} : vector<10x5xf32> to vector<10x1xf32>
    %16 = vector.extract_strided_slice %14 {offsets = [0, 0], sizes = [1, 256], strides = [1, 1]} : vector<5x256xf32> to vector<1x256xf32>
    %17 = vector.broadcast %15 : vector<10x1xf32> to vector<10x256xf32>
    %18 = vector.broadcast %16 : vector<1x256xf32> to vector<10x256xf32>
    %19 = arith.mulf %17, %18 : vector<10x256xf32>
    %20 = arith.addf %6, %19 : vector<10x256xf32>
    %21 = vector.extract_strided_slice %1 {offsets = [0, 1], sizes = [10, 1], strides = [1, 1]} : vector<10x5xf32> to vector<10x1xf32>
    %22 = vector.extract_strided_slice %14 {offsets = [1, 0], sizes = [1, 256], strides = [1, 1]} : vector<5x256xf32> to vector<1x256xf32>
    %23 = vector.broadcast %21 : vector<10x1xf32> to vector<10x256xf32>
    %24 = vector.broadcast %22 : vector<1x256xf32> to vector<10x256xf32>
    %25 = arith.mulf %23, %24 : vector<10x256xf32>
    %26 = arith.addf %20, %25 : vector<10x256xf32>
    %27 = vector.extract_strided_slice %1 {offsets = [0, 2], sizes = [10, 1], strides = [1, 1]} : vector<10x5xf32> to vector<10x1xf32>
    %28 = vector.extract_strided_slice %14 {offsets = [2, 0], sizes = [1, 256], strides = [1, 1]} : vector<5x256xf32> to vector<1x256xf32>
    %29 = vector.broadcast %27 : vector<10x1xf32> to vector<10x256xf32>
    %30 = vector.broadcast %28 : vector<1x256xf32> to vector<10x256xf32>
    %31 = arith.mulf %29, %30 : vector<10x256xf32>
    %32 = arith.addf %26, %31 : vector<10x256xf32>
    %33 = vector.extract_strided_slice %1 {offsets = [0, 3], sizes = [10, 1], strides = [1, 1]} : vector<10x5xf32> to vector<10x1xf32>
    %34 = vector.extract_strided_slice %14 {offsets = [3, 0], sizes = [1, 256], strides = [1, 1]} : vector<5x256xf32> to vector<1x256xf32>
    %35 = vector.broadcast %33 : vector<10x1xf32> to vector<10x256xf32>
    %36 = vector.broadcast %34 : vector<1x256xf32> to vector<10x256xf32>
    %37 = arith.mulf %35, %36 : vector<10x256xf32>
    %38 = arith.addf %32, %37 : vector<10x256xf32>
    %39 = vector.extract_strided_slice %1 {offsets = [0, 4], sizes = [10, 1], strides = [1, 1]} : vector<10x5xf32> to vector<10x1xf32>
    %40 = vector.extract_strided_slice %14 {offsets = [4, 0], sizes = [1, 256], strides = [1, 1]} : vector<5x256xf32> to vector<1x256xf32>
    %41 = vector.broadcast %39 : vector<10x1xf32> to vector<10x256xf32>
    %42 = vector.broadcast %40 : vector<1x256xf32> to vector<10x256xf32>
    %43 = arith.mulf %41, %42 : vector<10x256xf32>
    %44 = arith.addf %38, %43 : vector<10x256xf32>
    %cst = arith.constant 5.000000e-01 : f32
    %45 = vector.broadcast %cst : f32 to vector<10x256xf32>
    %46 = arith.mulf %45, %44 : vector<10x256xf32>
    %47 = math.tanh %46 : vector<10x256xf32>
    %cst_2 = arith.constant 5.000000e-01 : f32
    %48 = vector.broadcast %cst_2 : f32 to vector<10x256xf32>
    %49 = arith.mulf %48, %47 : vector<10x256xf32>
    %cst_3 = arith.constant 5.000000e-01 : f32
    %50 = vector.broadcast %cst_3 : f32 to vector<10x256xf32>
    %51 = arith.addf %50, %49 : vector<10x256xf32>
    %52 = arith.mulf %51, %8 : vector<10x256xf32>
    %cst_4 = arith.constant dense<0.000000e+00> : vector<256xf32>
    %53 = vector.multi_reduction <add>, %52, %cst_4 [0] : vector<10x256xf32> to vector<256xf32>
    %54 = vector.shape_cast %53 : vector<256xf32> to vector<1x256xf32>
    %55 = arith.addf %54, %10 : vector<1x256xf32>
    %cst_5 = arith.constant 5.000000e-01 : f32
    %56 = vector.broadcast %cst_5 : f32 to vector<1x256xf32>
    %57 = arith.mulf %56, %55 : vector<1x256xf32>
    %58 = math.tanh %57 : vector<1x256xf32>
    %cst_6 = arith.constant 5.000000e-01 : f32
    %59 = vector.broadcast %cst_6 : f32 to vector<1x256xf32>
    %60 = arith.mulf %59, %58 : vector<1x256xf32>
    %cst_7 = arith.constant 5.000000e-01 : f32
    %61 = vector.broadcast %cst_7 : f32 to vector<1x256xf32>
    %62 = arith.addf %61, %60 : vector<1x256xf32>
    %c0_8 = arith.constant 0 : index
    %63 = arith.index_cast %12 : i32 to index
    %64 = vector.load %arg3[%c0_8, %63] : memref<1x512xf32, #tpu.memory_space<vmem>>, vector<1x256xf32>
    tpu.vector_store %arg3[%c0_8, %63], %62 {strides = array<i32>} : memref<1x512xf32, #tpu.memory_space<vmem>>, vector<1x256xf32>,
    %c1_i32 = arith.constant 1 : i32
    %c256_i32_9 = arith.constant 256 : i32
    %65 = arith.muli %c1_i32, %c256_i32_9 : i32
    %66 = tpu.assume_multiple %65, 256 : i32
    %c0_10 = arith.constant 0 : index
    %67 = arith.index_cast %66 : i32 to index
    %68 = vector.load %arg2[%c0_10, %67] : memref<5x512xf32, #tpu.memory_space<vmem>>, vector<5x256xf32>
    %69 = vector.extract_strided_slice %1 {offsets = [0, 0], sizes = [10, 1], strides = [1, 1]} : vector<10x5xf32> to vector<10x1xf32>
    %70 = vector.extract_strided_slice %68 {offsets = [0, 0], sizes = [1, 256], strides = [1, 1]} : vector<5x256xf32> to vector<1x256xf32>
    %71 = vector.broadcast %69 : vector<10x1xf32> to vector<10x256xf32>
    %72 = vector.broadcast %70 : vector<1x256xf32> to vector<10x256xf32>
    %73 = arith.mulf %71, %72 : vector<10x256xf32>
    %74 = arith.addf %6, %73 : vector<10x256xf32>
    %75 = vector.extract_strided_slice %1 {offsets = [0, 1], sizes = [10, 1], strides = [1, 1]} : vector<10x5xf32> to vector<10x1xf32>
    %76 = vector.extract_strided_slice %68 {offsets = [1, 0], sizes = [1, 256], strides = [1, 1]} : vector<5x256xf32> to vector<1x256xf32>
    %77 = vector.broadcast %75 : vector<10x1xf32> to vector<10x256xf32>
    %78 = vector.broadcast %76 : vector<1x256xf32> to vector<10x256xf32>
    %79 = arith.mulf %77, %78 : vector<10x256xf32>
    %80 = arith.addf %74, %79 : vector<10x256xf32>
    %81 = vector.extract_strided_slice %1 {offsets = [0, 2], sizes = [10, 1], strides = [1, 1]} : vector<10x5xf32> to vector<10x1xf32>
    %82 = vector.extract_strided_slice %68 {offsets = [2, 0], sizes = [1, 256], strides = [1, 1]} : vector<5x256xf32> to vector<1x256xf32>
    %83 = vector.broadcast %81 : vector<10x1xf32> to vector<10x256xf32>
    %84 = vector.broadcast %82 : vector<1x256xf32> to vector<10x256xf32>
    %85 = arith.mulf %83, %84 : vector<10x256xf32>
    %86 = arith.addf %80, %85 : vector<10x256xf32>
    %87 = vector.extract_strided_slice %1 {offsets = [0, 3], sizes = [10, 1], strides = [1, 1]} : vector<10x5xf32> to vector<10x1xf32>
    %88 = vector.extract_strided_slice %68 {offsets = [3, 0], sizes = [1, 256], strides = [1, 1]} : vector<5x256xf32> to vector<1x256xf32>
    %89 = vector.broadcast %87 : vector<10x1xf32> to vector<10x256xf32>
    %90 = vector.broadcast %88 : vector<1x256xf32> to vector<10x256xf32>
    %91 = arith.mulf %89, %90 : vector<10x256xf32>
    %92 = arith.addf %86, %91 : vector<10x256xf32>
    %93 = vector.extract_strided_slice %1 {offsets = [0, 4], sizes = [10, 1], strides = [1, 1]} : vector<10x5xf32> to vector<10x1xf32>
    %94 = vector.extract_strided_slice %68 {offsets = [4, 0], sizes = [1, 256], strides = [1, 1]} : vector<5x256xf32> to vector<1x256xf32>
    %95 = vector.broadcast %93 : vector<10x1xf32> to vector<10x256xf32>
    %96 = vector.broadcast %94 : vector<1x256xf32> to vector<10x256xf32>
    %97 = arith.mulf %95, %96 : vector<10x256xf32>
    %98 = arith.addf %92, %97 : vector<10x256xf32>
    %cst_11 = arith.constant 5.000000e-01 : f32
    %99 = vector.broadcast %cst_11 : f32 to vector<10x256xf32>
    %100 = arith.mulf %99, %98 : vector<10x256xf32>
    %101 = math.tanh %100 : vector<10x256xf32>
    %cst_12 = arith.constant 5.000000e-01 : f32
    %102 = vector.broadcast %cst_12 : f32 to vector<10x256xf32>
    %103 = arith.mulf %102, %101 : vector<10x256xf32>
    %cst_13 = arith.constant 5.000000e-01 : f32
    %104 = vector.broadcast %cst_13 : f32 to vector<10x256xf32>
    %105 = arith.addf %104, %103 : vector<10x256xf32>
    %106 = arith.mulf %105, %8 : vector<10x256xf32>
    %cst_14 = arith.constant dense<0.000000e+00> : vector<256xf32>
    %107 = vector.multi_reduction <add>, %106, %cst_14 [0] : vector<10x256xf32> to vector<256xf32>
    %108 = vector.shape_cast %107 : vector<256xf32> to vector<1x256xf32>
    %109 = arith.addf %108, %10 : vector<1x256xf32>
    %cst_15 = arith.constant 5.000000e-01 : f32
    %110 = vector.broadcast %cst_15 : f32 to vector<1x256xf32>
    %111 = arith.mulf %110, %109 : vector<1x256xf32>
    %112 = math.tanh %111 : vector<1x256xf32>
    %cst_16 = arith.constant 5.000000e-01 : f32
    %113 = vector.broadcast %cst_16 : f32 to vector<1x256xf32>
    %114 = arith.mulf %113, %112 : vector<1x256xf32>
    %cst_17 = arith.constant 5.000000e-01 : f32
    %115 = vector.broadcast %cst_17 : f32 to vector<1x256xf32>
    %116 = arith.addf %115, %114 : vector<1x256xf32>
    %c0_18 = arith.constant 0 : index
    %117 = arith.index_cast %66 : i32 to index
    %118 = vector.load %arg3[%c0_18, %117] : memref<1x512xf32, #tpu.memory_space<vmem>>, vector<1x256xf32>
    tpu.vector_store %arg3[%c0_18, %117], %116 {strides = array<i32>} : memref<1x512xf32, #tpu.memory_space<vmem>>, vector<1x256xf32>,
    %c2_i32 = arith.constant 2 : i32
    return
  }
  func.func @transform_0(%arg0: i32) -> (i32, i32) {
    %c0_i32 = arith.constant 0 : i32
    %c0_i32_0 = arith.constant 0 : i32
    %c0_i32_1 = arith.constant 0 : i32
    return %c0_i32, %c0_i32_0 : i32, i32
  }
  func.func @transform_1(%arg0: i32) -> (i32, i32) {
    %c0_i32 = arith.constant 0 : i32
    %c0_i32_0 = arith.constant 0 : i32
    return %c0_i32, %arg0 : i32, i32
  }
  func.func @transform_2(%arg0: i32) -> (i32, i32) {
    %c0_i32 = arith.constant 0 : i32
    %c0_i32_0 = arith.constant 0 : i32
    return %c0_i32, %arg0 : i32, i32
  }
}

</mosaic_0001>

<bundles_post_ra>
// kernel: tpu_custom_call.1
= control target key start
LH: loop header
LB: loop body
LE: loop exit
PB: predicated region body
PF: predicated region fallthrough
CT: control target
= control target key end

     0   :  { %7 = vsyncpa [#allocation3], 0  ;;  %s606_s0 = inlined_call_operand.vmem [shape: f32[10,8], index: 0, kind: input, shape index: {}]   ;;  %s607_s1 = inlined_call_operand.hbm [shape: f32[5,512], index: 1, kind: input, shape index: {}]   ;;  %s608_s2 = inlined_call_operand.hbm [shape: f32[1,512], index: 2, kind: output, shape index: {}]  }
   0x1   :  { %8 = vsyncpa [#allocation4], 0  ;;  %s500_s9 = smov [#allocation2]   ;;  %s452_s13 = scalar_lea.hbm %s607_s1, 512 }
   0x2   :  { %s17_s10 = sshll.u32 %s500_s9, 4  ;;  %p453_p0 = scmp.ne.s32.totalorder %s607_s1, %s452_s13  ;;  %s18_s10 = int_to_ptr.vmem [resolvable:$true] %s17_s10 }
   0x3   :  { %p456_p1 = scmp.lt.u32.totalorder %s452_s13, %s607_s1 }
   0x5   :  { %p458_p2 = pnand %p456_p1, %p453_p0 }
   0x7   :  { %461 = shalt.err (!%p458_p2)
}
   0x8   :  { %s462_s18 = scalar_lea.vmem %s18_s10, 512  ;;  %p467_p4 = scmp.lt.s32.totalorder %s18_s10, %s18_s10 }
   0x9   :  { %p463_p3 = scmp.ne.s32.totalorder %s18_s10, %s462_s18  ;;  %p468_p5 = scmp.lt.s32.totalorder %s462_s18, %s462_s18 }
   0xb   :  { %p469_p6 = por %p468_p5, %p467_p4 }
   0xd   :  { %p470_p7 = pnand %p469_p6, %p463_p3 }
   0xf   :  { %473 = shalt.err (!%p470_p7)
}
  0x10   :  { %20 = dma.hbm_to_vmem [thread:$0]  %s607_s1, 512, %s18_s10, [#allocation3]  }
  0x11   :  { %496 = dma.done.wait [#allocation3], 512  }
  0x12   :  { %497 = vsyncadd [#allocation3], 4294966784  ;;  %v501_v0 = vmov 0   ;;  %v502_v1 = vmov 5   ;;  %v25_v2 = vld [vmem:[%s606_s0 + $0x8] sm:$0x3]  ;;  %v58_v10 = vlaneseq }
  0x13   :  { %415 = vset.pattern.permute.xlu0 %v501_v0  ;;  %416 = vset.pattern.permute.xlu1 %v502_v1  ;;  %v24_v3 = vld [vmem:[%s606_s0] sm:$0xff]  ;;  %v503_v4 = vmov 1   ;;  %v504_v5 = vmov 2   ;;  %v505_v6 = vmov 3   ;;  %v506_v7 = vmov 4   ;;  %s510_s0 = smov [#allocation5]  }
  0x14   :  { %33 = vperm.xlu1 %416, %v25_v2   ;;  %55 = vperm.xlu0 %415, %v25_v2   ;;  %v507_v8 = vmov 6   ;;  %v508_v9 = vmov 7   ;;  %v545_v11 = vshrl.u32 %v58_v10, 7  ;;  %v48_v14 = vld [vmem:[#allocation2] sm:$0x1f]  ;;  %vm190_vm0 = vcmask 1041408  }
  0x15   :  { %v49_v15 = vld [vmem:[#allocation2 + $0x8] sm:$0x1f]  ;;  %v241_v17 = vld [vmem:[#allocation2 + $0x10] sm:$0x1f]  ;;  %v242_v19 = vld [vmem:[#allocation2 + $0x18] sm:$0x1f] }
  0x16   :  { %v60_v12 = vsub.s32 0, %v545_v11  ;;  %v84_v18 = vsub.s32 1, %v545_v11  ;;  %v108_v20 = vsub.s32 2, %v545_v11  ;;  %v132_v25 = vsub.s32 3, %v545_v11  ;;  %s395_s1 = sshll.u32 %s510_s0, 4  ;;  %s396_s1 = int_to_ptr.vmem [resolvable:$true] %s395_s1 }
  0x17   :  { %v156_v30 = vsub.s32 4, %v545_v11  ;;  %vm237_vm1 = vcmp.lt.s32.totalorder %v58_v10, 256  ;;  %s474_s25 = scalar_lea.vmem %s396_s1, 64  ;;  %p479_p9 = scmp.lt.s32.totalorder %s396_s1, %s396_s1 }
  0x18   :  { %417 = vset.pattern.permute.xlu1 %v503_v4  ;;  %51 = vperm.xlu0 %415, %v24_v3   ;;  %v61_v21 = vrot.slane %v48_v14, %v60_v12  ;;  %v65_v22 = vrot.slane %v49_v15, %v60_v12  ;;  %v246_v23 = vrot.slane %v241_v17, %v60_v12  ;;  %p475_p8 = scmp.ne.s32.totalorder %s396_s1, %s474_s25  ;;  %p480_p10 = scmp.lt.s32.totalorder %s474_s25, %s474_s25 }
  0x19   :  { %79 = vperm.xlu1 %417, %v25_v2   ;;  %v250_v26 = vrot.slane %v242_v19, %v60_v12  ;;  %v85_v27 = vrot.slane %v48_v14, %v84_v18  ;;  %v89_v28 = vrot.slane %v49_v15, %v84_v18  ;;  %v262_v31 = vrot.slane %v241_v17, %v84_v18 }
  0x1a   :  { %v266_v32 = vrot.slane %v242_v19, %v84_v18  ;;  %v109_v33 = vrot.slane %v48_v14, %v108_v20  ;;  %v113_v34 = vrot.slane %v49_v15, %v108_v20  ;;  %v278_v37 = vrot.slane %v241_v17, %v108_v20  ;;  %p481_p11 = por %p480_p10, %p479_p9 }
  0x1b   :  { %v552_v38 = vrot.slane %v242_v19, %v108_v20  ;;  %v554_v39 = vrot.slane %v48_v14, %v132_v25  ;;  %v556_v40 = vrot.slane %v49_v15, %v132_v25  ;;  %v558_v41 = vrot.slane %v241_v17, %v132_v25 }
  0x1c   :  { %418 = vset.pattern.permute.xlu0 %v502_v1  ;;  %v560_v42 = vrot.slane %v242_v19, %v132_v25  ;;  %v562_v47 = vrot.slane %v48_v14, %v156_v30  ;;  %v564_v48 = vrot.slane %v49_v15, %v156_v30  ;;  %v566_v52 = vrot.slane %v241_v17, %v156_v30  ;;  %p482_p12 = pnand %p481_p11, %p475_p8 }
  0x1d   :  { %75 = vperm.xlu1 %417, %v24_v3   ;;  %28 = vperm.xlu0 %418, %v24_v3   ;;  %v568_v56 = vrot.slane %v242_v19, %v156_v30 }
  0x21   :  { %419 = vset.pattern.permute.xlu1 %v504_v5  ;;  %420 = vset.pattern.permute.xlu0 %v504_v5 }
  0x22   :  { %103 = vperm.xlu1 %419, %v25_v2   ;;  %99 = vperm.xlu0 %420, %v24_v3  }
  0x26   :  { %421 = vset.pattern.permute.xlu1 %v505_v6  ;;  %422 = vset.pattern.permute.xlu0 %v506_v7 }
  0x27   :  { %127 = vperm.xlu1 %421, %v25_v2   ;;  %151 = vperm.xlu0 %422, %v25_v2  }
  0x2b   :  { %123 = vperm.xlu1 %421, %v24_v3   ;;  %425 = vset.pattern.permute.xlu0 %v507_v8 }
  0x2c   :  { %37 = vperm.xlu0 %425, %v24_v3  }
  0x2f   :  { %423 = vset.pattern.permute.xlu1 %v506_v7 }
  0x30   :  { %147 = vperm.xlu1 %423, %v24_v3   ;;  %427 = vset.pattern.permute.xlu0 %v506_v7 }
  0x34   :  { %424 = vset.pattern.permute.xlu1 %v507_v8 }
  0x35   :  { %41 = vperm.xlu1 %424, %v25_v2  }
  0x39   :  { %426 = vset.pattern.permute.xlu1 %v508_v9 }
  0x3a   :  { %45 = vperm.xlu1 %426, %v24_v3  }
  0x93   :  { %v34_v13 = vpop.permute.xlu1 %33  ;;  %v56_v16 = vpop.permute.xlu0 %55 }
  0x94   :  { %v68_v35 = vmul.f32 %v61_v21, %v56_v16  ;;  %v69_v36 = vmul.f32 %v65_v22, %v56_v16  ;;  %v253_v49 = vmul.f32 %v246_v23, %v56_v16  ;;  %v254_v50 = vmul.f32 %v250_v26, %v56_v16 }
  0x96   :  { %v72_v53 = vadd.f32 %v68_v35, %v34_v13  ;;  %v73_v54 = vadd.f32 %v69_v36, %v34_v13  ;;  %v257_v1 = vadd.f32 %v253_v49, %v34_v13  ;;  %v258_v2 = vadd.f32 %v254_v50, %v34_v13 }
  0x97   :  { %v52_v24 = vpop.permute.xlu0 %51 }
  0x98   :  { %v80_v29 = vpop.permute.xlu1 %79  ;;  %v66_v43 = vmul.f32 %v61_v21, %v52_v24  ;;  %v67_v44 = vmul.f32 %v65_v22, %v52_v24  ;;  %v251_v51 = vmul.f32 %v246_v23, %v52_v24  ;;  %v252_v55 = vmul.f32 %v250_v26, %v52_v24 }
  0x99   :  { %v92_v57 = vmul.f32 %v85_v27, %v80_v29  ;;  %v93_v58 = vmul.f32 %v89_v28, %v80_v29  ;;  %v269_v59 = vmul.f32 %v262_v31, %v80_v29  ;;  %v270_v60 = vmul.f32 %v266_v32, %v80_v29 }
  0x9b   :  { %v96_v14 = vadd.f32 %v92_v57, %v72_v53  ;;  %v97_v15 = vadd.f32 %v93_v58, %v73_v54  ;;  %v273_v16 = vadd.f32 %v269_v59, %v257_v1  ;;  %v274_v17 = vadd.f32 %v270_v60, %v258_v2 }
  0x9c   :  { %v76_v45 = vpop.permute.xlu1 %75  ;;  %v29_v46 = vpop.permute.xlu0 %28 }
  0x9d   :  { %v90_v61 = vmul.f32 %v85_v27, %v76_v45  ;;  %v91_v62 = vmul.f32 %v89_v28, %v76_v45  ;;  %v70_v63 = vadd.f32 %v66_v43, %v29_v46  ;;  %v71_v0 = vadd.f32 %v67_v44, %v29_v46 }
  0x9e   :  { %v267_v3 = vmul.f32 %v262_v31, %v76_v45  ;;  %v255_v4 = vadd.f32 %v251_v51, %v29_v46  ;;  %v268_v18 = vmul.f32 %v266_v32, %v76_v45  ;;  %v256_v21 = vadd.f32 %v252_v55, %v29_v46 }
  0x9f   :  { %v94_v19 = vadd.f32 %v90_v61, %v70_v63  ;;  %v95_v20 = vadd.f32 %v91_v62, %v71_v0 }
  0xa0   :  { %v271_v22 = vadd.f32 %v267_v3, %v255_v4  ;;  %v272_v50 = vadd.f32 %v268_v18, %v256_v21 }
  0xa1   :  { %v104_v5 = vpop.permute.xlu1 %103  ;;  %v100_v12 = vpop.permute.xlu0 %99 }
  0xa2   :  { %v116_v6 = vmul.f32 %v109_v33, %v104_v5  ;;  %v117_v7 = vmul.f32 %v113_v34, %v104_v5  ;;  %v285_v8 = vmul.f32 %v278_v37, %v104_v5  ;;  %v286_v9 = vmul.f32 %v552_v38, %v104_v5 }
  0xa3   :  { %v114_v23 = vmul.f32 %v109_v33, %v100_v12  ;;  %v115_v13 = vmul.f32 %v113_v34, %v100_v12  ;;  %v283_v24 = vmul.f32 %v278_v37, %v100_v12  ;;  %v284_v54 = vmul.f32 %v552_v38, %v100_v12 }
  0xa4   :  { %v120_v25 = vadd.f32 %v116_v6, %v96_v14  ;;  %v121_v26 = vadd.f32 %v117_v7, %v97_v15  ;;  %v289_v27 = vadd.f32 %v285_v8, %v273_v16  ;;  %v290_v28 = vadd.f32 %v286_v9, %v274_v17 }
  0xa5   :  { %v118_v51 = vadd.f32 %v114_v23, %v94_v19  ;;  %v119_v53 = vadd.f32 %v115_v13, %v95_v20  ;;  %v287_v61 = vadd.f32 %v283_v24, %v271_v22  ;;  %v288_v5 = vadd.f32 %v284_v54, %v272_v50 }
  0xa6   :  { %v128_v29 = vpop.permute.xlu1 %127  ;;  %v152_v30 = vpop.permute.xlu0 %151 }
  0xa7   :  { %v140_v31 = vmul.f32 %v554_v39, %v128_v29  ;;  %v141_v35 = vmul.f32 %v556_v40, %v128_v29  ;;  %v301_v36 = vmul.f32 %v558_v41, %v128_v29  ;;  %v302_v32 = vmul.f32 %v560_v42, %v128_v29 }
  0xa8   :  { %v164_v43 = vmul.f32 %v562_v47, %v152_v30  ;;  %v165_v33 = vmul.f32 %v564_v48, %v152_v30  ;;  %v317_v34 = vmul.f32 %v566_v52, %v152_v30  ;;  %v318_v37 = vmul.f32 %v568_v56, %v152_v30 }
  0xa9   :  { %v144_v44 = vadd.f32 %v140_v31, %v120_v25  ;;  %v145_v45 = vadd.f32 %v141_v35, %v121_v26  ;;  %v305_v46 = vadd.f32 %v301_v36, %v289_v27  ;;  %v306_v49 = vadd.f32 %v302_v32, %v290_v28 }
  0xaa   :  { %v124_v55 = vpop.permute.xlu1 %123 }
  0xab   :  { %v168_v57 = vadd.f32 %v164_v43, %v144_v44  ;;  %v169_v58 = vadd.f32 %v165_v33, %v145_v45  ;;  %v321_v59 = vadd.f32 %v317_v34, %v305_v46  ;;  %v322_v60 = vadd.f32 %v318_v37, %v306_v49  ;;  %v38_v33 = vpop.permute.xlu0 %37 }
  0xac   :  { %v138_v62 = vmul.f32 %v554_v39, %v124_v55  ;;  %v139_v63 = vmul.f32 %v556_v40, %v124_v55  ;;  %v299_v0 = vmul.f32 %v558_v41, %v124_v55  ;;  %v300_v4 = vmul.f32 %v560_v42, %v124_v55 }
  0xad   :  { %v172_v1 = vmul.f32 0.5, %v168_v57  ;;  %v173_v2 = vmul.f32 0.5, %v169_v58  ;;  %v325_v3 = vmul.f32 0.5, %v321_v59  ;;  %v326_v6 = vmul.f32 0.5, %v322_v60 }
  0xae   :  { %v142_v38 = vadd.f32 %v138_v62, %v118_v51  ;;  %v143_v7 = vadd.f32 %v139_v63, %v119_v53  ;;  %v303_v8 = vadd.f32 %v299_v0, %v287_v61  ;;  %v304_v41 = vadd.f32 %v300_v4, %v288_v5 }
  0xaf   :  { %428 = vtanh.f32 %v172_v1  ;;  %v148_v9 = vpop.permute.xlu1 %147 }
  0xb0   :  { %430 = vtanh.f32 %v173_v2  ;;  %v162_v12 = vmul.f32 %v562_v47, %v148_v9  ;;  %v163_v39 = vmul.f32 %v564_v48, %v148_v9  ;;  %v315_v40 = vmul.f32 %v566_v52, %v148_v9 }
  0xb1   :  { %432 = vtanh.f32 %v325_v3  ;;  %v316_v14 = vmul.f32 %v568_v56, %v148_v9 }
  0xb2   :  { %434 = vtanh.f32 %v326_v6  ;;  %v166_v42 = vadd.f32 %v162_v12, %v142_v38  ;;  %v167_v15 = vadd.f32 %v163_v39, %v143_v7  ;;  %v319_v16 = vadd.f32 %v315_v40, %v303_v8 }
  0xb3   :  { %v320_v17 = vadd.f32 %v316_v14, %v304_v41 }
  0xb4   :  { %v170_v18 = vmul.f32 0.5, %v166_v42  ;;  %v171_v19 = vmul.f32 0.5, %v167_v15  ;;  %v323_v20 = vmul.f32 0.5, %v319_v16  ;;  %v42_v26 = vpop.permute.xlu1 %41 }
  0xb5   :  { %v324_v21 = vmul.f32 0.5, %v320_v17 }
  0xb6   :  { %436 = vtanh.f32 %v170_v18 }
  0xb7   :  { %438 = vtanh.f32 %v171_v19 }
  0xb8   :  { %440 = vtanh.f32 %v323_v20 }
  0xb9   :  { %v429_v47 = vpop.eup %428  ;;  %442 = vtanh.f32 %v324_v21  ;;  %v46_v18 = vpop.permute.xlu1 %45 }
  0xba   :  { %v431_v48 = vpop.eup %430  ;;  %v180_v52 = vmul.f32 0.5, %v429_v47 }
  0xbb   :  { %v433_v22 = vpop.eup %432  ;;  %v181_v23 = vmul.f32 0.5, %v431_v48 }
  0xbc   :  { %v435_v13 = vpop.eup %434  ;;  %v333_v56 = vmul.f32 0.5, %v433_v22  ;;  %v184_v25 = vadd.f32 0.5, %v180_v52 }
  0xbd   :  { %v334_v24 = vmul.f32 0.5, %v435_v13  ;;  %v185_v27 = vadd.f32 0.5, %v181_v23 }
  0xbe   :  { %v337_v29 = vadd.f32 0.5, %v333_v56  ;;  %v188_v32 = vmul.f32 %v184_v25, %v42_v26 }
  0xbf   :  { %v338_v31 = vadd.f32 0.5, %v334_v24  ;;  %v189_v37 = vmul.f32 %v185_v27, %v42_v26 }
  0xc0   :  { %v437_v28 = vpop.eup %436  ;;  %v341_v46 = vmul.f32 %v337_v29, %v42_v26  ;;  %v191_v55 = vsel %vm190_vm0, %v188_v32, 0.0 }
  0xc1   :  { %v439_v30 = vpop.eup %438  ;;  %v178_v35 = vmul.f32 0.5, %v437_v28  ;;  %v342_v51 = vmul.f32 %v338_v31, %v42_v26  ;;  %v199_v59 = vsel %vm190_vm0, %v189_v37, 0.0 }
  0xc2   :  { %v441_v36 = vpop.eup %440  ;;  %v179_v43 = vmul.f32 0.5, %v439_v30  ;;  %v343_v62 = vsel %vm190_vm0, %v341_v46, 0.0  ;;  %v509_v30 = vmov 1966171168  }
  0xc3   :  { %v443_v34 = vpop.eup %442  ;;  %v182_v44 = vadd.f32 0.5, %v178_v35  ;;  %v331_v45 = vmul.f32 0.5, %v441_v36  ;;  %v351_v1 = vsel %vm190_vm0, %v342_v51, 0.0  ;;  %v221_v31 = vunpack.c.l.s4 %v509_v30 }
  0xc4   :  { %v183_v49 = vadd.f32 0.5, %v179_v43  ;;  %v332_v50 = vmul.f32 0.5, %v443_v34 }
  0xc5   :  { %v335_v53 = vadd.f32 0.5, %v331_v45  ;;  %v186_v54 = vmul.f32 %v182_v44, %v38_v33  ;;  %v222_v36 = vunpack.c.0.s8 %v221_v31 }
  0xc6   :  { %v336_v57 = vadd.f32 0.5, %v332_v50  ;;  %v187_v58 = vmul.f32 %v183_v49, %v38_v33 }
  0xc7   :  { %v192_v60 = vadd.f32 %v191_v55, %v186_v54  ;;  %v339_v61 = vmul.f32 %v335_v53, %v38_v33  ;;  %v225_v50 = vsub.s32 %v222_v36, %v545_v11 }
  0xc8   :  { %v200_v63 = vadd.f32 %v199_v59, %v187_v58  ;;  %v340_v0 = vmul.f32 %v336_v57, %v38_v33 }
  0xc9   :  { %v193_v2 = vrot.slane %v192_v60, 4  ;;  %v344_v3 = vadd.f32 %v343_v62, %v339_v61 }
  0xca   :  { %v201_v4 = vrot.slane %v200_v63, 4  ;;  %v352_v5 = vadd.f32 %v351_v1, %v340_v0 }
  0xcb   :  { %v194_v6 = vadd.f32 %v193_v2, %v192_v60  ;;  %v345_v38 = vrot.slane %v344_v3, 4 }
  0xcc   :  { %v202_v7 = vadd.f32 %v201_v4, %v200_v63  ;;  %v353_v8 = vrot.slane %v352_v5, 4 }
  0xcd   :  { %v346_v9 = vadd.f32 %v345_v38, %v344_v3  ;;  %v195_v12 = vrot.slane %v194_v6, 2 }
  0xce   :  { %v354_v39 = vadd.f32 %v353_v8, %v352_v5  ;;  %v203_v40 = vrot.slane %v202_v7, 2 }
  0xcf   :  { %v196_v41 = vadd.f32 %v195_v12, %v194_v6  ;;  %v347_v14 = vrot.slane %v346_v9, 2 }
  0xd0   :  { %v204_v42 = vadd.f32 %v203_v40, %v202_v7  ;;  %v355_v15 = vrot.slane %v354_v39, 2 }
  0xd1   :  { %v197_v16 = vrot.slane %v196_v41, 1  ;;  %v348_v17 = vadd.f32 %v347_v14, %v346_v9 }
  0xd2   :  { %v205_v19 = vrot.slane %v204_v42, 1  ;;  %v356_v20 = vadd.f32 %v355_v15, %v354_v39 }
  0xd3   :  { %v198_v21 = vadd.f32 %v197_v16, %v196_v41  ;;  %v349_v47 = vrot.slane %v348_v17, 1 }
  0xd4   :  { %v206_v48 = vadd.f32 %v205_v19, %v204_v42  ;;  %v357_v52 = vrot.slane %v356_v20, 1 }
  0xd5   :  { %v207_v22 = vadd.f32 %v198_v21, %v46_v18  ;;  %v350_v23 = vadd.f32 %v349_v47, %v348_v17 }
  0xd6   :  { %v208_v13 = vadd.f32 %v206_v48, %v46_v18  ;;  %v358_v56 = vadd.f32 %v357_v52, %v356_v20 }
  0xd7   :  { %v209_v24 = vmul.f32 0.5, %v207_v22  ;;  %v359_v25 = vadd.f32 %v350_v23, %v46_v18 }
  0xd8   :  { %v210_v26 = vmul.f32 0.5, %v208_v13  ;;  %v360_v27 = vadd.f32 %v358_v56, %v46_v18 }
  0xd9   :  { %444 = vtanh.f32 %v209_v24  ;;  %v361_v28 = vmul.f32 0.5, %v359_v25 }
  0xda   :  { %446 = vtanh.f32 %v210_v26  ;;  %v362_v29 = vmul.f32 0.5, %v360_v27 }
  0xdb   :  { %448 = vtanh.f32 %v361_v28 }
  0xdc   :  { %450 = vtanh.f32 %v362_v29 }
  0xe3   :  { %v445_v35 = vpop.eup %444 }
  0xe4   :  { %v447_v32 = vpop.eup %446  ;;  %v213_v43 = vmul.f32 0.5, %v445_v35 }
  0xe5   :  { %v449_v33 = vpop.eup %448  ;;  %v214_v34 = vmul.f32 0.5, %v447_v32 }
  0xe6   :  { %v451_v37 = vpop.eup %450  ;;  %v215_v44 = vadd.f32 0.5, %v213_v43  ;;  %v365_v45 = vmul.f32 0.5, %v449_v33 }
  0xe7   :  { %v216_v46 = vadd.f32 0.5, %v214_v34  ;;  %v366_v49 = vmul.f32 0.5, %v451_v37 }
  0xe8   :  { %v367_v51 = vadd.f32 0.5, %v365_v45 }
  0xe9   :  { %v219_v53 = vcombine.low %v215_v44, %v216_v46  ;;  %v368_v54 = vadd.f32 0.5, %v366_v49 }
  0xeb   :  { %v371_v55 = vcombine.low %v367_v51, %v368_v54  ;;  %v226_v57 = vrot.slane %v219_v53, %v225_v50 }
  0xed   :  { %v233_v58 = vrot.slane %v226_v57, %v225_v50  ;;  %v378_v59 = vrot.slane %v371_v55, %v225_v50 }
  0xef   :  { %239 = vst.msk [vmem:[#allocation5] sm:$0x3] %vm237_vm1, %v233_v58  ;;  %v385_v60 = vrot.slane %v378_v59, %v225_v50 }
  0xf1   :  { %388 = vst.msk [vmem:[#allocation5 + $0x2] sm:$0x3] %vm237_vm1, %v385_v60 }
  0xf2   :  { %485 = shalt.err (!%p482_p12)
}
  0xf3   :  { %s486_s28 = scalar_lea.hbm %s608_s2, 64 }
  0xf4   :  { %p487_p13 = scmp.ne.s32.totalorder %s608_s2, %s486_s28  ;;  %p490_p0 = scmp.lt.u32.totalorder %s486_s28, %s608_s2 }
  0xf6   :  { %p492_p1 = pnand %p490_p0, %p487_p13 }
  0xf8   :  { %495 = shalt.err (!%p492_p1)
}
  0xf9   :  { %398 = dma.vmem_to_hbm [thread:$0]  %s396_s1, 64, %s608_s2, [#allocation4]  }
  0xfa   :  { %498 = dma.done.wait [#allocation4], 64  }
  0xfb   :  { %499 = vsyncadd [#allocation4], 4294967232 }
  0xfc   :  { %402 = vsyncpa [#allocation3], 1 }
  0xfd   :  { %403 = vsyncpa [#allocation4], 1 }

</bundles_post_ra>
